<compile_context>
chip_gen: v5e
topology: v5e:2x2
jax: 0.10.0
libtpu: 0.0.40
codegen_flags: <defaults>
</compile_context>

<pallas_src>
import functools

import jax
import jax.numpy as jnp
from jax import lax
from jax.experimental import pallas as pl
from jax.experimental.pallas import tpu as pltpu


# ------------------------- in-kernel helpers -------------------------

def _shift_lanes(x, s):
    """x_shift[:, m] = x[:, m + s] (zero fill past either end). `s` is a Python int."""
    if s == 0:
        return x
    c, m = x.shape
    fill = jnp.zeros((c, abs(s)), x.dtype)
    if s > 0:
        return jnp.concatenate([x[:, s:], fill], axis=1)
    return jnp.concatenate([fill, x[:, : m + s]], axis=1)


def _conv_taps(x, w_mat, masks, shifts):
    """'Same' convolution as one MXU matmul.

    x      : (Cin, M)      activations, spatial flattened on the lane axis
    w_mat  : (Cout, T*Cin) dense weights, contraction rows ordered (tap, ci)
    masks  : (T, M)        1.0 where the tap's source pixel lies inside the image
    shifts : tuple of T Python ints (dh*W + dw per tap)
    """
    cols = []
    for t, s in enumerate(shifts):
        xs = _shift_lanes(x, s)
        cols.append(xs * masks[t : t + 1, :])      # zero out-of-image source pixels
    patches = jnp.concatenate(cols, axis=0)         # (T*Cin, M), built entirely in VMEM
    return jnp.dot(w_mat, patches, preferred_element_type=jnp.float32)


# ------------------------- fused Pallas kernel -------------------------

def _fused_forward_kernel(x_ref, w1_ref, b1_ref, m1_ref, w2_ref, b2_ref, m2_ref,
                          gamma_ref, beta_ref, keep_ref, o_ref,
                          *, shifts1, shifts2, eps):
    x = x_ref[...]                                                # (Cin, M)

    # conv1 + bias + ReLU
    h = _conv_taps(x, w1_ref[...], m1_ref[...], shifts1) + b1_ref[...]
    h = jnp.maximum(h, 0.0)                                       # (C1, M)

    # conv2 + bias + ReLU
    h = _conv_taps(h, w2_ref[...], m2_ref[...], shifts2) + b2_ref[...]
    h = jnp.maximum(h, 0.0)                                       # (C2, M)

    # BatchNorm2d (training mode): biased batch statistics over (N, H, W),
    # which is exactly the lane axis in this layout.
    mean = jnp.mean(h, axis=1, keepdims=True)                     # (C2, 1)
    var = jnp.mean(jnp.square(h - mean), axis=1, keepdims=True)   # biased variance
    y = (h - mean) * lax.rsqrt(var + eps) * gamma_ref[...] + beta_ref[...]

    # Dropout (training semantics): keep mask already scaled by 1/(1-p).
    o_ref[...] = y * keep_ref[...]


# ------------------------- JAX glue -------------------------

def _tap_geometry(N, H, W, ksize, pad):
    """Per-tap lane shift and validity mask for a stride-1 'same' convolution."""
    assert H + 2 * pad - ksize + 1 == H and W + 2 * pad - ksize + 1 == W, (
        "fused kernel assumes a 'same' convolution (stride 1, 2*pad == k-1)")
    m = jnp.arange(N * H * W, dtype=jnp.int32)
    h = (m // W) % H
    w = m % W
    shifts, masks = [], []
    for kh in range(ksize):
        for kw in range(ksize):
            dh, dw = kh - pad, kw - pad
            shifts.append(dh * W + dw)
            ok = (h + dh >= 0) & (h + dh < H) & (w + dw >= 0) & (w + dw < W)
            masks.append(ok)
    return tuple(shifts), jnp.stack(masks, axis=0).astype(jnp.float32)   # (k*k, M)


def _dense_weight_matrix(w, groups):
    """PyTorch (Cout, Cin/groups, k, k) -> dense (Cout, k*k*Cin).

    Block-diagonal over groups so grouped convs stay a single dense matmul.
    Contraction rows ordered (kh, kw, ci) to match `_conv_taps`.
    """
    Cout, Cin_g, kh, kw = w.shape
    Cin = Cin_g * groups
    Cout_g = Cout // groups
    wd = jnp.zeros((Cout, kh, kw, Cin), w.dtype)
    for g in range(groups):
        wd = wd.at[g * Cout_g:(g + 1) * Cout_g, :, :, g * Cin_g:(g + 1) * Cin_g].set(
            jnp.transpose(w[g * Cout_g:(g + 1) * Cout_g], (0, 2, 3, 1)))
    return wd.reshape(Cout, kh * kw * Cin)


def init_params(key, n_channel, in_channel, kernel_size, padding, groups):
    c1 = n_channel // 2
    k1, k2, k3, k4 = jax.random.split(key, 4)
    fan1 = (in_channel // groups) * kernel_size * kernel_size
    fan2 = (c1 // groups) * 9
    w1 = jax.random.normal(k1, (c1, in_channel // groups, kernel_size, kernel_size),
                           jnp.float32) / jnp.sqrt(float(fan1))
    b1 = jax.random.normal(k2, (c1,), jnp.float32) * 0.01
    w2 = jax.random.normal(k3, (n_channel, c1 // groups, 3, 3),
                           jnp.float32) / jnp.sqrt(float(fan2))
    b2 = jax.random.normal(k4, (n_channel,), jnp.float32) * 0.01
    gamma = jnp.ones((n_channel,), jnp.float32)   # BatchNorm2d default affine init
    beta = jnp.zeros((n_channel,), jnp.float32)
    return dict(w1=w1, b1=b1, w2=w2, b2=b2, gamma=gamma, beta=beta,
                padding=padding, groups=groups)


def mini_model_forward(params, x_nchw, key, drop_rate=0.3, eps=1e-5):
    """Accepts / returns NCHW (PyTorch convention); (C, N*H*W) lane-dense inside."""
    p = params
    N, Cin, H, W = x_nchw.shape
    M = N * H * W
    C1 = p['w1'].shape[0]
    C2 = p['w2'].shape[0]
    k1 = p['w1'].shape[2]

    # channels on sublanes, flattened N*H*W on lanes
    x_flat = jnp.transpose(x_nchw.astype(jnp.float32), (1, 0, 2, 3)).reshape(Cin, M)

    shifts1, masks1 = _tap_geometry(N, H, W, k1, p['padding'])
    shifts2, masks2 = _tap_geometry(N, H, W, 3, 1)

    w1m = _dense_weight_matrix(p['w1'], p['groups'])
    w2m = _dense_weight_matrix(p['w2'], p['groups'])

    # Dropout keep mask, training semantics: Bernoulli(1-p) scaled by 1/(1-p).
    # TODO(synk): cannot bit-match torch's RNG stream; the on-chip pltpu.prng_* path has
    # no interpret-mode lowering, so the mask is drawn with jax.random outside the kernel.
    keep = (jax.random.uniform(key, (C2, M)) >= drop_rate).astype(jnp.float32)
    keep = keep * (1.0 / (1.0 - drop_rate))

    kern = functools.partial(_fused_forward_kernel,
                             shifts1=shifts1, shifts2=shifts2, eps=eps)
    vmem = pl.BlockSpec(memory_space=pltpu.MemorySpace.VMEM)
    # Single fused invocation: total live data < 100 KB, so no grid / tiling needed here.
    # (At larger N/H/W: tile M on a grid marked "parallel" and re-derive tiles per chip.)
    out = pl.pallas_call(
        kern,
        out_shape=jax.ShapeDtypeStruct((C2, M), jnp.float32),
        in_specs=[vmem] * 10,
        out_specs=vmem,
    )(x_flat, w1m, p['b1'].reshape(C1, 1), masks1,
      w2m, p['b2'].reshape(C2, 1), masks2,
      p['gamma'].reshape(C2, 1), p['beta'].reshape(C2, 1), keep)

    return jnp.transpose(out.reshape(C2, N, H, W), (1, 0, 2, 3))   # back to NCHW


if __name__ == "__main__":
    key = jax.random.PRNGKey(0)
    k_param, k_x, k_drop = jax.random.split(key, 3)

    # mini_model(n_channel=8, scale_factor=2, in_channel=4, kernel_size=3, padding=1, groups=1)
    n_channel, in_channel, kernel_size, padding, groups = 8, 4, 3, 1, 1
    params = init_params(k_param, n_channel, in_channel, kernel_size, padding, groups)

    x = jax.random.normal(k_x, (2, 4, 16, 16), jnp.float32)   # NCHW
    out = mini_model_forward(params, x, k_drop)
    out = jax.block_until_ready(out)

    assert out.shape == (2, 8, 16, 16), out.shape
    print("KERNEL_OK")
</pallas_src>

<mosaic_0001>
module attributes {stable_mosaic.version = 11 : i64} {
  func.func @_fused_forward_kernel(%arg0: memref<4x512xf32, #tpu.memory_space<vmem>>, %arg1: memref<4x36xf32, #tpu.memory_space<vmem>>, %arg2: memref<4x1xf32, #tpu.memory_space<vmem>>, %arg3: memref<9x512xf32, #tpu.memory_space<vmem>>, %arg4: memref<8x36xf32, #tpu.memory_space<vmem>>, %arg5: memref<8x1xf32, #tpu.memory_space<vmem>>, %arg6: memref<9x512xf32, #tpu.memory_space<vmem>>, %arg7: memref<8x1xf32, #tpu.memory_space<vmem>>, %arg8: memref<8x1xf32, #tpu.memory_space<vmem>>, %arg9: memref<8x512xf32, #tpu.memory_space<vmem>>, %arg10: memref<8x512xf32, #tpu.memory_space<vmem>>) attributes {dimension_semantics = [], scalar_prefetch = 0 : i64, scratch_operands = 0 : i64, tpu.core_type = #tpu.core_type<tc>} {
    %c0 = arith.constant 0 : index
    %c0_0 = arith.constant 0 : index
    %0 = vector.load %arg0[%c0, %c0_0] : memref<4x512xf32, #tpu.memory_space<vmem>>, vector<4x512xf32>
    %c0_1 = arith.constant 0 : index
    %c0_2 = arith.constant 0 : index
    %1 = vector.load %arg1[%c0_1, %c0_2] : memref<4x36xf32, #tpu.memory_space<vmem>>, vector<4x36xf32>
    %c0_3 = arith.constant 0 : index
    %c0_4 = arith.constant 0 : index
    %2 = vector.load %arg3[%c0_3, %c0_4] : memref<9x512xf32, #tpu.memory_space<vmem>>, vector<9x512xf32>
    %cst = arith.constant 0.000000e+00 : f32
    %3 = vector.broadcast %cst : f32 to vector<4x17xf32>
    %4 = vector.extract_strided_slice %0 {offsets = [0, 0], sizes = [4, 495], strides = [1, 1]} : vector<4x512xf32> to vector<4x495xf32>
    %5 = tpu.concatenate %3, %4 in 1 : vector<4x17xf32>, vector<4x495xf32> -> vector<4x512xf32>
    %6 = vector.extract_strided_slice %2 {offsets = [0, 0], sizes = [1, 512], strides = [1, 1]} : vector<9x512xf32> to vector<1x512xf32>
    %7 = vector.broadcast %6 : vector<1x512xf32> to vector<4x512xf32>
    %8 = arith.mulf %5, %7 : vector<4x512xf32>
    %cst_5 = arith.constant 0.000000e+00 : f32
    %9 = vector.broadcast %cst_5 : f32 to vector<4x16xf32>
    %10 = vector.extract_strided_slice %0 {offsets = [0, 0], sizes = [4, 496], strides = [1, 1]} : vector<4x512xf32> to vector<4x496xf32>
    %11 = tpu.concatenate %9, %10 in 1 : vector<4x16xf32>, vector<4x496xf32> -> vector<4x512xf32>
    %12 = vector.extract_strided_slice %2 {offsets = [1, 0], sizes = [1, 512], strides = [1, 1]} : vector<9x512xf32> to vector<1x512xf32>
    %13 = vector.broadcast %12 : vector<1x512xf32> to vector<4x512xf32>
    %14 = arith.mulf %11, %13 : vector<4x512xf32>
    %cst_6 = arith.constant 0.000000e+00 : f32
    %15 = vector.broadcast %cst_6 : f32 to vector<4x15xf32>
    %16 = vector.extract_strided_slice %0 {offsets = [0, 0], sizes = [4, 497], strides = [1, 1]} : vector<4x512xf32> to vector<4x497xf32>
    %17 = tpu.concatenate %15, %16 in 1 : vector<4x15xf32>, vector<4x497xf32> -> vector<4x512xf32>
    %18 = vector.extract_strided_slice %2 {offsets = [2, 0], sizes = [1, 512], strides = [1, 1]} : vector<9x512xf32> to vector<1x512xf32>
    %19 = vector.broadcast %18 : vector<1x512xf32> to vector<4x512xf32>
    %20 = arith.mulf %17, %19 : vector<4x512xf32>
    %cst_7 = arith.constant 0.000000e+00 : f32
    %21 = vector.broadcast %cst_7 : f32 to vector<4x1xf32>
    %22 = vector.extract_strided_slice %0 {offsets = [0, 0], sizes = [4, 511], strides = [1, 1]} : vector<4x512xf32> to vector<4x511xf32>
    %23 = tpu.concatenate %21, %22 in 1 : vector<4x1xf32>, vector<4x511xf32> -> vector<4x512xf32>
    %24 = vector.extract_strided_slice %2 {offsets = [3, 0], sizes = [1, 512], strides = [1, 1]} : vector<9x512xf32> to vector<1x512xf32>
    %25 = vector.broadcast %24 : vector<1x512xf32> to vector<4x512xf32>
    %26 = arith.mulf %23, %25 : vector<4x512xf32>
    %27 = vector.extract_strided_slice %2 {offsets = [4, 0], sizes = [1, 512], strides = [1, 1]} : vector<9x512xf32> to vector<1x512xf32>
    %28 = vector.broadcast %27 : vector<1x512xf32> to vector<4x512xf32>
    %29 = arith.mulf %0, %28 : vector<4x512xf32>
    %cst_8 = arith.constant 0.000000e+00 : f32
    %30 = vector.broadcast %cst_8 : f32 to vector<4x1xf32>
    %31 = vector.extract_strided_slice %0 {offsets = [0, 1], sizes = [4, 511], strides = [1, 1]} : vector<4x512xf32> to vector<4x511xf32>
    %32 = tpu.concatenate %31, %30 in 1 : vector<4x511xf32>, vector<4x1xf32> -> vector<4x512xf32>
    %33 = vector.extract_strided_slice %2 {offsets = [5, 0], sizes = [1, 512], strides = [1, 1]} : vector<9x512xf32> to vector<1x512xf32>
    %34 = vector.broadcast %33 : vector<1x512xf32> to vector<4x512xf32>
    %35 = arith.mulf %32, %34 : vector<4x512xf32>
    %cst_9 = arith.constant 0.000000e+00 : f32
    %36 = vector.broadcast %cst_9 : f32 to vector<4x15xf32>
    %37 = vector.extract_strided_slice %0 {offsets = [0, 15], sizes = [4, 497], strides = [1, 1]} : vector<4x512xf32> to vector<4x497xf32>
    %38 = tpu.concatenate %37, %36 in 1 : vector<4x497xf32>, vector<4x15xf32> -> vector<4x512xf32>
    %39 = vector.extract_strided_slice %2 {offsets = [6, 0], sizes = [1, 512], strides = [1, 1]} : vector<9x512xf32> to vector<1x512xf32>
    %40 = vector.broadcast %39 : vector<1x512xf32> to vector<4x512xf32>
    %41 = arith.mulf %38, %40 : vector<4x512xf32>
    %cst_10 = arith.constant 0.000000e+00 : f32
    %42 = vector.broadcast %cst_10 : f32 to vector<4x16xf32>
    %43 = vector.extract_strided_slice %0 {offsets = [0, 16], sizes = [4, 496], strides = [1, 1]} : vector<4x512xf32> to vector<4x496xf32>
    %44 = tpu.concatenate %43, %42 in 1 : vector<4x496xf32>, vector<4x16xf32> -> vector<4x512xf32>
    %45 = vector.extract_strided_slice %2 {offsets = [7, 0], sizes = [1, 512], strides = [1, 1]} : vector<9x512xf32> to vector<1x512xf32>
    %46 = vector.broadcast %45 : vector<1x512xf32> to vector<4x512xf32>
    %47 = arith.mulf %44, %46 : vector<4x512xf32>
    %cst_11 = arith.constant 0.000000e+00 : f32
    %48 = vector.broadcast %cst_11 : f32 to vector<4x17xf32>
    %49 = vector.extract_strided_slice %0 {offsets = [0, 17], sizes = [4, 495], strides = [1, 1]} : vector<4x512xf32> to vector<4x495xf32>
    %50 = tpu.concatenate %49, %48 in 1 : vector<4x495xf32>, vector<4x17xf32> -> vector<4x512xf32>
    %51 = vector.extract_strided_slice %2 {offsets = [8, 0], sizes = [1, 512], strides = [1, 1]} : vector<9x512xf32> to vector<1x512xf32>
    %52 = vector.broadcast %51 : vector<1x512xf32> to vector<4x512xf32>
    %53 = arith.mulf %50, %52 : vector<4x512xf32>
    %54 = tpu.concatenate %8, %14, %20, %26, %29, %35, %41, %47, %53 in 0 : vector<4x512xf32>, vector<4x512xf32>, vector<4x512xf32>, vector<4x512xf32>, vector<4x512xf32>, vector<4x512xf32>, vector<4x512xf32>, vector<4x512xf32>, vector<4x512xf32> -> vector<36x512xf32>
    %cst_12 = arith.constant dense<0.000000e+00> : vector<4x512xf32>
    %55 = tpu.matmul %1, %54, %cst_12 {dimension_numbers = #tpu.dot_dimension_numbers<[1], [0], [0], [1], [0, 0, 1, 1], [], []>} : vector<4x36xf32>, vector<36x512xf32>, vector<4x512xf32> -> vector<4x512xf32>
    %c0_13 = arith.constant 0 : index
    %c0_14 = arith.constant 0 : index
    %56 = vector.load %arg2[%c0_13, %c0_14] : memref<4x1xf32, #tpu.memory_space<vmem>>, vector<4x1xf32>
    %57 = vector.broadcast %56 : vector<4x1xf32> to vector<4x512xf32>
    %58 = arith.addf %55, %57 : vector<4x512xf32>
    %cst_15 = arith.constant 0.000000e+00 : f32
    %59 = vector.broadcast %cst_15 : f32 to vector<4x512xf32>
    %60 = arith.maximumf %58, %59 : vector<4x512xf32>
    %c0_16 = arith.constant 0 : index
    %c0_17 = arith.constant 0 : index
    %61 = vector.load %arg4[%c0_16, %c0_17] : memref<8x36xf32, #tpu.memory_space<vmem>>, vector<8x36xf32>
    %c0_18 = arith.constant 0 : index
    %c0_19 = arith.constant 0 : index
    %62 = vector.load %arg6[%c0_18, %c0_19] : memref<9x512xf32, #tpu.memory_space<vmem>>, vector<9x512xf32>
    %cst_20 = arith.constant 0.000000e+00 : f32
    %63 = vector.broadcast %cst_20 : f32 to vector<4x17xf32>
    %64 = vector.extract_strided_slice %60 {offsets = [0, 0], sizes = [4, 495], strides = [1, 1]} : vector<4x512xf32> to vector<4x495xf32>
    %65 = tpu.concatenate %63, %64 in 1 : vector<4x17xf32>, vector<4x495xf32> -> vector<4x512xf32>
    %66 = vector.extract_strided_slice %62 {offsets = [0, 0], sizes = [1, 512], strides = [1, 1]} : vector<9x512xf32> to vector<1x512xf32>
    %67 = vector.broadcast %66 : vector<1x512xf32> to vector<4x512xf32>
    %68 = arith.mulf %65, %67 : vector<4x512xf32>
    %cst_21 = arith.constant 0.000000e+00 : f32
    %69 = vector.broadcast %cst_21 : f32 to vector<4x16xf32>
    %70 = vector.extract_strided_slice %60 {offsets = [0, 0], sizes = [4, 496], strides = [1, 1]} : vector<4x512xf32> to vector<4x496xf32>
    %71 = tpu.concatenate %69, %70 in 1 : vector<4x16xf32>, vector<4x496xf32> -> vector<4x512xf32>
    %72 = vector.extract_strided_slice %62 {offsets = [1, 0], sizes = [1, 512], strides = [1, 1]} : vector<9x512xf32> to vector<1x512xf32>
    %73 = vector.broadcast %72 : vector<1x512xf32> to vector<4x512xf32>
    %74 = arith.mulf %71, %73 : vector<4x512xf32>
    %cst_22 = arith.constant 0.000000e+00 : f32
    %75 = vector.broadcast %cst_22 : f32 to vector<4x15xf32>
    %76 = vector.extract_strided_slice %60 {offsets = [0, 0], sizes = [4, 497], strides = [1, 1]} : vector<4x512xf32> to vector<4x497xf32>
    %77 = tpu.concatenate %75, %76 in 1 : vector<4x15xf32>, vector<4x497xf32> -> vector<4x512xf32>
    %78 = vector.extract_strided_slice %62 {offsets = [2, 0], sizes = [1, 512], strides = [1, 1]} : vector<9x512xf32> to vector<1x512xf32>
    %79 = vector.broadcast %78 : vector<1x512xf32> to vector<4x512xf32>
    %80 = arith.mulf %77, %79 : vector<4x512xf32>
    %cst_23 = arith.constant 0.000000e+00 : f32
    %81 = vector.broadcast %cst_23 : f32 to vector<4x1xf32>
    %82 = vector.extract_strided_slice %60 {offsets = [0, 0], sizes = [4, 511], strides = [1, 1]} : vector<4x512xf32> to vector<4x511xf32>
    %83 = tpu.concatenate %81, %82 in 1 : vector<4x1xf32>, vector<4x511xf32> -> vector<4x512xf32>
    %84 = vector.extract_strided_slice %62 {offsets = [3, 0], sizes = [1, 512], strides = [1, 1]} : vector<9x512xf32> to vector<1x512xf32>
    %85 = vector.broadcast %84 : vector<1x512xf32> to vector<4x512xf32>
    %86 = arith.mulf %83, %85 : vector<4x512xf32>
    %87 = vector.extract_strided_slice %62 {offsets = [4, 0], sizes = [1, 512], strides = [1, 1]} : vector<9x512xf32> to vector<1x512xf32>
    %88 = vector.broadcast %87 : vector<1x512xf32> to vector<4x512xf32>
    %89 = arith.mulf %60, %88 : vector<4x512xf32>
    %cst_24 = arith.constant 0.000000e+00 : f32
    %90 = vector.broadcast %cst_24 : f32 to vector<4x1xf32>
    %91 = vector.extract_strided_slice %60 {offsets = [0, 1], sizes = [4, 511], strides = [1, 1]} : vector<4x512xf32> to vector<4x511xf32>
    %92 = tpu.concatenate %91, %90 in 1 : vector<4x511xf32>, vector<4x1xf32> -> vector<4x512xf32>
    %93 = vector.extract_strided_slice %62 {offsets = [5, 0], sizes = [1, 512], strides = [1, 1]} : vector<9x512xf32> to vector<1x512xf32>
    %94 = vector.broadcast %93 : vector<1x512xf32> to vector<4x512xf32>
    %95 = arith.mulf %92, %94 : vector<4x512xf32>
    %cst_25 = arith.constant 0.000000e+00 : f32
    %96 = vector.broadcast %cst_25 : f32 to vector<4x15xf32>
    %97 = vector.extract_strided_slice %60 {offsets = [0, 15], sizes = [4, 497], strides = [1, 1]} : vector<4x512xf32> to vector<4x497xf32>
    %98 = tpu.concatenate %97, %96 in 1 : vector<4x497xf32>, vector<4x15xf32> -> vector<4x512xf32>
    %99 = vector.extract_strided_slice %62 {offsets = [6, 0], sizes = [1, 512], strides = [1, 1]} : vector<9x512xf32> to vector<1x512xf32>
    %100 = vector.broadcast %99 : vector<1x512xf32> to vector<4x512xf32>
    %101 = arith.mulf %98, %100 : vector<4x512xf32>
    %cst_26 = arith.constant 0.000000e+00 : f32
    %102 = vector.broadcast %cst_26 : f32 to vector<4x16xf32>
    %103 = vector.extract_strided_slice %60 {offsets = [0, 16], sizes = [4, 496], strides = [1, 1]} : vector<4x512xf32> to vector<4x496xf32>
    %104 = tpu.concatenate %103, %102 in 1 : vector<4x496xf32>, vector<4x16xf32> -> vector<4x512xf32>
    %105 = vector.extract_strided_slice %62 {offsets = [7, 0], sizes = [1, 512], strides = [1, 1]} : vector<9x512xf32> to vector<1x512xf32>
    %106 = vector.broadcast %105 : vector<1x512xf32> to vector<4x512xf32>
    %107 = arith.mulf %104, %106 : vector<4x512xf32>
    %cst_27 = arith.constant 0.000000e+00 : f32
    %108 = vector.broadcast %cst_27 : f32 to vector<4x17xf32>
    %109 = vector.extract_strided_slice %60 {offsets = [0, 17], sizes = [4, 495], strides = [1, 1]} : vector<4x512xf32> to vector<4x495xf32>
    %110 = tpu.concatenate %109, %108 in 1 : vector<4x495xf32>, vector<4x17xf32> -> vector<4x512xf32>
    %111 = vector.extract_strided_slice %62 {offsets = [8, 0], sizes = [1, 512], strides = [1, 1]} : vector<9x512xf32> to vector<1x512xf32>
    %112 = vector.broadcast %111 : vector<1x512xf32> to vector<4x512xf32>
    %113 = arith.mulf %110, %112 : vector<4x512xf32>
    %114 = tpu.concatenate %68, %74, %80, %86, %89, %95, %101, %107, %113 in 0 : vector<4x512xf32>, vector<4x512xf32>, vector<4x512xf32>, vector<4x512xf32>, vector<4x512xf32>, vector<4x512xf32>, vector<4x512xf32>, vector<4x512xf32>, vector<4x512xf32> -> vector<36x512xf32>
    %cst_28 = arith.constant dense<0.000000e+00> : vector<8x512xf32>
    %115 = tpu.matmul %61, %114, %cst_28 {dimension_numbers = #tpu.dot_dimension_numbers<[1], [0], [0], [1], [0, 0, 1, 1], [], []>} : vector<8x36xf32>, vector<36x512xf32>, vector<8x512xf32> -> vector<8x512xf32>
    %c0_29 = arith.constant 0 : index
    %c0_30 = arith.constant 0 : index
    %116 = vector.load %arg5[%c0_29, %c0_30] : memref<8x1xf32, #tpu.memory_space<vmem>>, vector<8x1xf32>
    %117 = vector.broadcast %116 : vector<8x1xf32> to vector<8x512xf32>
    %118 = arith.addf %115, %117 : vector<8x512xf32>
    %cst_31 = arith.constant 0.000000e+00 : f32
    %119 = vector.broadcast %cst_31 : f32 to vector<8x512xf32>
    %120 = arith.maximumf %118, %119 : vector<8x512xf32>
    %cst_32 = arith.constant dense<0.000000e+00> : vector<8xf32>
    %121 = vector.multi_reduction <add>, %120, %cst_32 [1] : vector<8x512xf32> to vector<8xf32>
    %122 = vector.shape_cast %121 : vector<8xf32> to vector<8x1xf32>
    %cst_33 = arith.constant 5.120000e+02 : f32
    %123 = vector.broadcast %cst_33 : f32 to vector<8x1xf32>
    %124 = arith.divf %122, %123 : vector<8x1xf32>
    %125 = vector.broadcast %124 : vector<8x1xf32> to vector<8x512xf32>
    %126 = arith.subf %120, %125 : vector<8x512xf32>
    %127 = arith.mulf %126, %126 : vector<8x512xf32>
    %cst_34 = arith.constant dense<0.000000e+00> : vector<8xf32>
    %128 = vector.multi_reduction <add>, %127, %cst_34 [1] : vector<8x512xf32> to vector<8xf32>
    %129 = vector.shape_cast %128 : vector<8xf32> to vector<8x1xf32>
    %cst_35 = arith.constant 5.120000e+02 : f32
    %130 = vector.broadcast %cst_35 : f32 to vector<8x1xf32>
    %131 = arith.divf %129, %130 : vector<8x1xf32>
    %132 = vector.broadcast %124 : vector<8x1xf32> to vector<8x512xf32>
    %133 = arith.subf %120, %132 : vector<8x512xf32>
    %cst_36 = arith.constant 9.99999974E-6 : f32
    %134 = vector.broadcast %cst_36 : f32 to vector<8x1xf32>
    %135 = arith.addf %131, %134 : vector<8x1xf32>
    %136 = math.rsqrt %135 : vector<8x1xf32>
    %137 = vector.broadcast %136 : vector<8x1xf32> to vector<8x512xf32>
    %138 = arith.mulf %133, %137 : vector<8x512xf32>
    %c0_37 = arith.constant 0 : index
    %c0_38 = arith.constant 0 : index
    %139 = vector.load %arg7[%c0_37, %c0_38] : memref<8x1xf32, #tpu.memory_space<vmem>>, vector<8x1xf32>
    %140 = vector.broadcast %139 : vector<8x1xf32> to vector<8x512xf32>
    %141 = arith.mulf %138, %140 : vector<8x512xf32>
    %c0_39 = arith.constant 0 : index
    %c0_40 = arith.constant 0 : index
    %142 = vector.load %arg8[%c0_39, %c0_40] : memref<8x1xf32, #tpu.memory_space<vmem>>, vector<8x1xf32>
    %143 = vector.broadcast %142 : vector<8x1xf32> to vector<8x512xf32>
    %144 = arith.addf %141, %143 : vector<8x512xf32>
    %c0_41 = arith.constant 0 : index
    %c0_42 = arith.constant 0 : index
    %145 = vector.load %arg9[%c0_41, %c0_42] : memref<8x512xf32, #tpu.memory_space<vmem>>, vector<8x512xf32>
    %146 = arith.mulf %144, %145 : vector<8x512xf32>
    %c0_43 = arith.constant 0 : index
    %c0_44 = arith.constant 0 : index
    %147 = vector.load %arg10[%c0_43, %c0_44] : memref<8x512xf32, #tpu.memory_space<vmem>>, vector<8x512xf32>
    tpu.vector_store %arg10[%c0_43, %c0_44], %146 {strides = array<i32>} : memref<8x512xf32, #tpu.memory_space<vmem>>, vector<8x512xf32>,
    return
  }
}

</mosaic_0001>

<bundles_post_ra>
// kernel: tpu_custom_call.1
= control target key start
LH: loop header
LB: loop body
LE: loop exit
PB: predicated region body
PF: predicated region fallthrough
CT: control target
= control target key end

     0   :  { %15 = vsyncpa [#allocation3], 0  ;;  %s1702_s0 = inlined_call_operand.vmem [shape: f32[4,512], index: 0, kind: input, shape index: {}]   ;;  %s1703_s1 = inlined_call_operand.vmem [shape: f32[4,36], index: 1, kind: input, shape index: {}]   ;;  %s1704_s2 = inlined_call_operand.vmem [shape: f32[4,1], index: 2, kind: input, shape index: {}]   ;;  %s1705_s3 = inlined_call_operand.hbm [shape: f32[9,512], index: 3, kind: input, shape index: {}]   ;;  %s1706_s4 = inlined_call_operand.vmem [shape: f32[8,36], index: 4, kind: input, shape index: {}]   ;;  %s1707_s5 = inlined_call_operand.vmem [shape: f32[8,1], index: 5, kind: input, shape index: {}]   ;;  %s1708_s6 = inlined_call_operand.hbm [shape: f32[9,512], index: 6, kind: input, shape index: {}]   ;;  %s1709_s7 = inlined_call_operand.vmem [shape: f32[8,1], index: 7, kind: input, shape index: {}]   ;;  %s1710_s8 = inlined_call_operand.vmem [shape: f32[8,1], index: 8, kind: input, shape index: {}]   ;;  %s1711_s9 = inlined_call_operand.hbm [shape: f32[8,512], index: 9, kind: input, shape index: {}]   ;;  %s1712_s10 = inlined_call_operand.hbm [shape: f32[8,512], index: 10, kind: output, shape index: {}]  }
   0x1   :  { %16 = vsyncpa [#allocation6], 0 }
   0x2   :  { %17 = vsyncpa [#allocation4], 0  ;;  %s45_s15 = sshll.u32 %s1708_s6, 4  ;;  %s1172_s16 = smov [#allocation5]   ;;  %s46_s15 = int_to_ptr.hbm [resolvable:$true] %s45_s15 }
   0x3   :  { %s47_s17 = sshll.u32 %s1172_s16, 4  ;;  %s28_s20 = sshll.u32 %s1705_s3, 4  ;;  %s48_s17 = int_to_ptr.vmem [resolvable:$true] %s47_s17  ;;  %s29_s20 = int_to_ptr.hbm [resolvable:$true] %s28_s20 }
   0x4   :  { %s1173_s21 = smov 512   ;;  %s1174_s22 = smov 32  }
   0x5   :  { %53 = dma.hbm_to_vmem [thread:$0]  %s46_s15, 1024, %s48_s17, [#allocation6], %s1173_s21, %s1173_s21, %s1174_s22  }
   0x6   :  { %s1175_s23 = smov [#allocation2]   ;;  %s63_s27 = sshll.u32 %s1711_s9, 4  ;;  %s64_s27 = int_to_ptr.hbm [resolvable:$true] %s63_s27 }
   0x7   :  { %s30_s24 = sshll.u32 %s1175_s23, 4  ;;  %s1176_s6 = smov [#allocation7]   ;;  %s31_s24 = int_to_ptr.vmem [resolvable:$true] %s30_s24 }
   0x8   :  { %36 = dma.hbm_to_vmem [thread:$0]  %s29_s20, 1024, %s31_s24, [#allocation3], %s1173_s21, %s1173_s21, %s1174_s22  }
   0x9   :  { %s65_s28 = sshll.u32 %s1176_s6, 4  ;;  %s66_s28 = int_to_ptr.vmem [resolvable:$true] %s65_s28 }
   0xa   :  { %68 = dma.hbm_to_vmem [thread:$0]  %s64_s27, 512, %s66_s28, [#allocation6]  }
   0xb   :  { %1166 = dma.done.wait [#allocation3], 1024  }
   0xc   :  { %1167 = vsyncadd [#allocation3], 4294966272 }
   0xd   :  { %1168 = dma.done.wait [#allocation6], 1536  }
   0xe   :  { %1169 = vsyncadd [#allocation6], 4294965760  ;;  %v1255_v0 = vld [vmem:[%s1702_s0 + $0x8] sm:$0xff]  ;;  %v1260_v1 = vld [vmem:[%s1702_s0] sm:$0xff]  ;;  %s1177_s9 = smov 17   ;;  %s1178_s0 = smov 16  }
   0xf   :  { %96 = vst [vmem:[#allocation1 + $0x10] ss:$2 sm:$0xff] %v1255_v0  ;;  %s1179_s12 = smov 15   ;;  %s1180_s13 = smov 1   ;;  %v1314_v34 = vld [vmem:[#allocation2 + $0x10] sm:$0xff]  ;;  %v1316_v35 = vld [vmem:[#allocation2 + $0x18] sm:$0xff] }
  0x10   :  { %94 = vst [vmem:[#allocation1] ss:$2 sm:$0xff] %v1260_v1  ;;  %s1181_s14 = smov 127   ;;  %s1182_s15 = smov 113   ;;  %v224_v36 = vperm.slane %v1314_v34, 4  ;;  %v225_v37 = vperm.slane %v1316_v35, 4 }
  0x11   :  { %s1183_s16 = smov 112   ;;  %s1184_s17 = smov 111   ;;  %vm232_vm0 = vcmask 1043456   ;;  %vm109_vm1 = vcmask 138240   ;;  %v120_v44 = vperm.slane %v1314_v34, 0  ;;  %v121_v45 = vperm.slane %v1316_v35, 0 }
  0x12   :  { %v231_v38 = vrot.slane %v225_v37, 4  ;;  %v1330_v46 = vld [vmem:[#allocation2 + $0x8] sm:$0xff]  ;;  %v1333_v50 = vld [vmem:[#allocation2] sm:$0xff]  ;;  %vm141_vm2 = vcmask 130048   ;;  %v152_v60 = vperm.slane %v1314_v34, 1  ;;  %v153_v61 = vperm.slane %v1316_v35, 1 }
  0x13   :  { %v223_v47 = vperm.slane %v1330_v46, 4  ;;  %v222_v53 = vperm.slane %v1333_v50, 4  ;;  %vm350_vm3 = vcmask 908288   ;;  %vm173_vm4 = vcmask 121856   ;;  %s1013_s6 = sshll.u32 %s1712_s10, 4  ;;  %s1014_s6 = int_to_ptr.hbm [resolvable:$true] %s1013_s6 }
  0x14   :  { %v234_v39 = vsel %vm232_vm0, %v224_v36, %v231_v38  ;;  %vm318_vm5 = vcmask 916480   ;;  %vm254_vm6 = vcmask 1039360   ;;  %vm205_vm7 = vcmask 7168  }
  0x15   :  { %v238_v40 = vmul.f32 %v234_v39, %v1255_v0  ;;  %v230_v54 = vrot.slane %v223_v47, 4  ;;  %v266_v37 = vperm.slane %v1316_v35, 5  ;;  %v216_v38 = vperm.slane %v1314_v34, 3 }
  0x16   :  { %v100_v2 = vld.sshfl [vmem:[#allocation1 + $0x18] sm:$0xff pattern:$0x75316420]  ;;  %v99_v3 = vld.sshfl [vmem:[#allocation1 + $0x10] sm:$0xff pattern:$0x75316420] }
  0x17   :  { %107 = vrot.lane.b32.xlu1 %v100_v2, %s1177_s9  ;;  %105 = vrot.lane.b32.xlu0 %v99_v3, %s1177_s9  ;;  %128 = vst [vmem:[#allocation1 + $0x10] ss:$2 sm:$0xff] %v1255_v0  ;;  %v98_v4 = vld.sshfl [vmem:[#allocation1 + $0x8] sm:$0xff pattern:$0x75316420]  ;;  %v233_v58 = vsel %vm232_vm0, %v222_v53, %v230_v54  ;;  %vm286_vm8 = vcmask 924672  }
  0x18   :  { %103 = vrot.lane.b32.xlu2 %v98_v4, %s1177_s9  ;;  %v1268_v5 = vld.sshfl [vmem:[#allocation1] sm:$0xff pattern:$0x75316420]  ;;  %v237_v59 = vmul.f32 %v233_v58, %v1260_v1  ;;  %v185_v53 = vperm.slane %v1316_v35, 2  ;;  %vm450_vm9 = vcmask 293888  }
  0x19   :  { %126 = vst [vmem:[#allocation1] ss:$2 sm:$0xff] %v1260_v1  ;;  %v1060_v54 = vld [vmem:[#allocation2 + $0x38] ss:$0 sm:$0xff] }
  0x1e   :  { %v132_v6 = vld.sshfl [vmem:[#allocation1 + $0x18] sm:$0xff pattern:$0x75316420]  ;;  %v131_v7 = vld.sshfl [vmem:[#allocation1 + $0x10] sm:$0xff pattern:$0x75316420] }
  0x1f   :  { %139 = vrot.lane.b32.xlu1 %v132_v6, %s1178_s0  ;;  %137 = vrot.lane.b32.xlu0 %v131_v7, %s1178_s0  ;;  %160 = vst [vmem:[#allocation1 + $0x10] ss:$2 sm:$0xff] %v1255_v0 }
  0x20   :  { %v130_v8 = vld.sshfl [vmem:[#allocation1 + $0x8] sm:$0xff pattern:$0x75316420]  ;;  %v1274_v9 = vld.sshfl [vmem:[#allocation1] sm:$0xff pattern:$0x75316420] }
  0x21   :  { %135 = vrot.lane.b32.xlu2 %v130_v8, %s1178_s0  ;;  %158 = vst [vmem:[#allocation1] ss:$2 sm:$0xff] %v1260_v1 }
  0x26   :  { %v164_v10 = vld.sshfl [vmem:[#allocation1 + $0x18] sm:$0xff pattern:$0x75316420]  ;;  %v163_v11 = vld.sshfl [vmem:[#allocation1 + $0x10] sm:$0xff pattern:$0x75316420] }
  0x27   :  { %171 = vrot.lane.b32.xlu1 %v164_v10, %s1179_s12  ;;  %169 = vrot.lane.b32.xlu0 %v163_v11, %s1179_s12  ;;  %192 = vst [vmem:[#allocation1 + $0x10] ss:$2 sm:$0xff] %v1255_v0 }
  0x28   :  { %v162_v12 = vld.sshfl [vmem:[#allocation1 + $0x8] sm:$0xff pattern:$0x75316420]  ;;  %v161_v13 = vld.sshfl [vmem:[#allocation1] sm:$0xff pattern:$0x75316420] }
  0x29   :  { %167 = vrot.lane.b32.xlu2 %v162_v12, %s1179_s12  ;;  %190 = vst [vmem:[#allocation1] ss:$2 sm:$0xff] %v1260_v1 }
  0x2e   :  { %v196_v14 = vld.sshfl [vmem:[#allocation1 + $0x18] sm:$0xff pattern:$0x75316420]  ;;  %v195_v15 = vld.sshfl [vmem:[#allocation1 + $0x10] sm:$0xff pattern:$0x75316420] }
  0x2f   :  { %203 = vrot.lane.b32.xlu1 %v196_v14, %s1180_s13  ;;  %201 = vrot.lane.b32.xlu0 %v195_v15, %s1180_s13  ;;  %241 = vst [vmem:[#allocation1 + $0x10] ss:$2 sm:$0xff] %v1255_v0 }
  0x30   :  { %v193_v16 = vld.sshfl [vmem:[#allocation1] sm:$0xff pattern:$0x75316420]  ;;  %v194_v17 = vld.sshfl [vmem:[#allocation1 + $0x8] sm:$0xff pattern:$0x75316420] }
  0x31   :  { %199 = vrot.lane.b32.xlu2 %v194_v17, %s1180_s13  ;;  %239 = vst [vmem:[#allocation1] ss:$2 sm:$0xff] %v1260_v1 }
  0x36   :  { %v244_v18 = vld.sshfl [vmem:[#allocation1 + $0x10] sm:$0xff pattern:$0x75316420]  ;;  %v245_v19 = vld.sshfl [vmem:[#allocation1 + $0x18] sm:$0xff pattern:$0x75316420] }
  0x37   :  { %273 = vst [vmem:[#allocation1 + $0x10] ss:$2 sm:$0xff] %v1255_v0 }
  0x38   :  { %v242_v20 = vld.sshfl [vmem:[#allocation1] sm:$0xff pattern:$0x75316420]  ;;  %v243_v21 = vld.sshfl [vmem:[#allocation1 + $0x8] sm:$0xff pattern:$0x75316420] }
  0x39   :  { %250 = vrot.lane.b32.xlu2 %v244_v18, %s1181_s14  ;;  %246 = vrot.lane.b32.xlu0 %v242_v20, %s1181_s14  ;;  %271 = vst [vmem:[#allocation1] ss:$2 sm:$0xff] %v1260_v1 }
  0x3a   :  { %248 = vrot.lane.b32.xlu1 %v243_v21, %s1181_s14  ;;  %v151_v21 = vperm.slane %v1330_v46, 1 }
  0x3e   :  { %v276_v22 = vld.sshfl [vmem:[#allocation1 + $0x10] sm:$0xff pattern:$0x75316420]  ;;  %v277_v23 = vld.sshfl [vmem:[#allocation1 + $0x18] sm:$0xff pattern:$0x75316420] }
  0x3f   :  { %305 = vst [vmem:[#allocation1 + $0x10] ss:$2 sm:$0xff] %v1255_v0 }
  0x40   :  { %v274_v24 = vld.sshfl [vmem:[#allocation1] sm:$0xff pattern:$0x75316420]  ;;  %v275_v25 = vld.sshfl [vmem:[#allocation1 + $0x8] sm:$0xff pattern:$0x75316420] }
  0x41   :  { %252 = vrot.lane.b32.xlu2 %v245_v19, %s1181_s14  ;;  %282 = vrot.lane.b32.xlu0 %v276_v22, %s1182_s15  ;;  %303 = vst [vmem:[#allocation1] ss:$2 sm:$0xff] %v1260_v1 }
  0x42   :  { %284 = vrot.lane.b32.xlu1 %v277_v23, %s1182_s15 }
  0x46   :  { %v309_v26 = vld.sshfl [vmem:[#allocation1 + $0x18] sm:$0xff pattern:$0x75316420]  ;;  %v308_v27 = vld.sshfl [vmem:[#allocation1 + $0x10] sm:$0xff pattern:$0x75316420] }
  0x47   :  { %337 = vst [vmem:[#allocation1 + $0x10] ss:$2 sm:$0xff] %v1255_v0 }
  0x48   :  { %v306_v28 = vld.sshfl [vmem:[#allocation1] sm:$0xff pattern:$0x75316420]  ;;  %v307_v29 = vld.sshfl [vmem:[#allocation1 + $0x8] sm:$0xff pattern:$0x75316420] }
  0x49   :  { %314 = vrot.lane.b32.xlu0 %v308_v27, %s1183_s16  ;;  %278 = vrot.lane.b32.xlu2 %v274_v24, %s1182_s15  ;;  %335 = vst [vmem:[#allocation1] ss:$2 sm:$0xff] %v1260_v1 }
  0x4e   :  { %v340_v30 = vld.sshfl [vmem:[#allocation1 + $0x10] sm:$0xff pattern:$0x75316420]  ;;  %v341_v31 = vld.sshfl [vmem:[#allocation1 + $0x18] sm:$0xff pattern:$0x75316420] }
  0x4f   :  { %346 = vrot.lane.b32.xlu1 %v340_v30, %s1184_s17  ;;  %395 = vst [vmem:[#allocation1 + $0x10] ss:$2 sm:$0xff] %v238_v40  ;;  %v329_v30 = vperm.slane %v1314_v34, 7 }
  0x50   :  { %v339_v32 = vld.sshfl [vmem:[#allocation1 + $0x8] sm:$0xff pattern:$0x75316420]  ;;  %v338_v33 = vld.sshfl [vmem:[#allocation1] sm:$0xff pattern:$0x75316420] }
  0x51   :  { %316 = vrot.lane.b32.xlu0 %v309_v26, %s1183_s16  ;;  %310 = vrot.lane.b32.xlu2 %v306_v28, %s1183_s16  ;;  %393 = vst [vmem:[#allocation1] ss:$2 sm:$0xff] %v237_v59  ;;  %v1058_v26 = vld [vmem:[#allocation2 + $0x28] ss:$0 sm:$0xff]  ;;  %v184_v28 = vperm.slane %v1314_v34, 2  ;;  %v297_v59 = vperm.slane %v1314_v34, 6 }
  0x57   :  { %348 = vrot.lane.b32.xlu1 %v341_v31, %s1184_s17  ;;  %v330_v31 = vperm.slane %v1316_v35, 7 }
  0x59   :  { %312 = vrot.lane.b32.xlu0 %v307_v29, %s1183_s16  ;;  %344 = vrot.lane.b32.xlu2 %v339_v32, %s1184_s17  ;;  %v265_v32 = vperm.slane %v1314_v34, 5 }
  0x5f   :  { %197 = vrot.lane.b32.xlu1 %v193_v16, %s1180_s13 }
  0x61   :  { %280 = vrot.lane.b32.xlu0 %v275_v25, %s1182_s15  ;;  %133 = vrot.lane.b32.xlu2 %v1274_v9, %s1178_s0 }
  0x67   :  { %342 = vrot.lane.b32.xlu1 %v338_v33, %s1184_s17 }
  0x69   :  { %165 = vrot.lane.b32.xlu0 %v161_v13, %s1179_s12 }
  0x6f   :  { %101 = vrot.lane.b32.xlu1 %v1268_v5, %s1177_s9 }
  0x72   :  { %v1324_v41 = vpop.permute.xlu2 %103 }
  0x7b   :  { %v136_v42 = vpop.permute.xlu2 %135 }
  0x83   :  { %v1326_v43 = vpop.permute.xlu2 %167 }
  0x89   :  { %v108_v48 = vpop.permute.xlu1 %107  ;;  %v106_v49 = vpop.permute.xlu0 %105 }
  0x8a   :  { %v111_v51 = vsel %vm109_vm1, %v1324_v41, %v106_v49  ;;  %v112_v52 = vsel %vm109_vm1, %v106_v49, %v108_v48 }
  0x8b   :  { %v124_v55 = vmul.f32 %v120_v44, %v111_v51  ;;  %v125_v56 = vmul.f32 %v121_v45, %v112_v52  ;;  %v1339_v57 = vpop.permute.xlu2 %199  ;;  %v217_v45 = vperm.slane %v1316_v35, 3  ;;  %v1059_v52 = vld [vmem:[#allocation2 + $0x30] ss:$0 sm:$0xff] }
  0x91   :  { %v140_v62 = vpop.permute.xlu1 %139  ;;  %v138_v63 = vpop.permute.xlu0 %137 }
  0x92   :  { %v143_v0 = vsel %vm141_vm2, %v136_v42, %v138_v63  ;;  %v144_v2 = vsel %vm141_vm2, %v138_v63, %v140_v62 }
  0x93   :  { %v156_v3 = vmul.f32 %v152_v60, %v143_v0  ;;  %v157_v4 = vmul.f32 %v153_v61, %v144_v2  ;;  %v1347_v5 = vpop.permute.xlu2 %250  ;;  %v298_v60 = vperm.slane %v1316_v35, 6  ;;  %v1185_v61 = vmov 0  }
  0x94   :  { %1056 = vset.pattern.permute.xlu2 %v1185_v61  ;;  %1057 = vset.pattern.permute.xlu0 %v1185_v61 }
  0x95   :  { %v373_v6 = vrot.slane %v156_v3, 4  ;;  %v374_v7 = vrot.slane %v157_v4, 4 }
  0x97   :  { %v1350_v1 = vsel %vm232_vm0, %v124_v55, %v373_v6  ;;  %v1353_v8 = vsel %vm232_vm0, %v125_v56, %v374_v7  ;;  %v444_v55 = vld [vmem:[%s1704_s2] sm:$0xf] }
  0x98   :  { %447 = vperm.xlu2 %1056, %v444_v55  }
  0x99   :  { %v1355_v9 = vpop.permute.xlu0 %169  ;;  %v1357_v11 = vpop.permute.xlu1 %171 }
  0x9a   :  { %v175_v35 = vsel %vm173_vm4, %v1326_v43, %v1355_v9 }
  0x9b   :  { %v253_v10 = vpop.permute.xlu2 %252 }
  0x9c   :  { %v262_v44 = vsel %vm254_vm6, %v253_v10, 0.0 }
  0x9d   :  { %v270_v58 = vmul.f32 %v266_v37, %v262_v44  ;;  %v399_v37 = vld.sshfl [vmem:[#allocation1 + $0x18] sm:$0xff pattern:$0x75316420] }
  0xa1   :  { %v202_v12 = vpop.permute.xlu0 %201  ;;  %v204_v14 = vpop.permute.xlu1 %203 }
  0xa2   :  { %v207_v47 = vsel %vm205_vm7, %v1339_v57, %v202_v12  ;;  %v208_v48 = vsel %vm205_vm7, %v202_v12, %v204_v14  ;;  %v264_v12 = vperm.slane %v1330_v46, 5 }
  0xa3   :  { %v1359_v13 = vpop.permute.xlu2 %278  ;;  %v220_v62 = vmul.f32 %v216_v38, %v207_v47  ;;  %v221_v63 = vmul.f32 %v217_v45, %v208_v48 }
  0xab   :  { %v1361_v15 = vpop.permute.xlu0 %246  ;;  %v1363_v16 = vpop.permute.xlu2 %310 }
  0xac   :  { %v1365_v17 = vpop.permute.xlu1 %248 }
  0xad   :  { %v256_v38 = vsel %vm254_vm6, %v1365_v17, %v1347_v5 }
  0xb3   :  { %v1367_v18 = vpop.permute.xlu0 %282  ;;  %v1369_v19 = vpop.permute.xlu2 %344 }
  0xb4   :  { %v285_v20 = vpop.permute.xlu1 %284 }
  0xb5   :  { %v289_v0 = vsel %vm286_vm8, %v1367_v18, %v285_v20  ;;  %v294_v2 = vsel %vm286_vm8, %v285_v20, 0.0 }
  0xb6   :  { %v301_v20 = vmul.f32 %v297_v59, %v289_v0  ;;  %v255_v59 = vsel %vm254_vm6, %v1361_v15, %v1365_v17  ;;  %v397_v0 = vld.sshfl [vmem:[#allocation1 + $0x8] sm:$0xff pattern:$0x75316420] }
  0xbb   :  { %v1372_v22 = vpop.permute.xlu0 %314  ;;  %v1374_v23 = vpop.permute.xlu2 %133 }
  0xbc   :  { %v142_v24 = vsel %vm141_vm2, %v1374_v23, %v136_v42  ;;  %v257_v42 = vsel %vm254_vm6, %v1347_v5, %v253_v10  ;;  %v268_v5 = vmul.f32 %v264_v12, %v256_v38  ;;  %v119_v38 = vperm.slane %v1330_v46, 0 }
  0xbd   :  { %v1378_v25 = vmul.f32 %v151_v21, %v142_v24  ;;  %v269_v56 = vmul.f32 %v265_v32, %v257_v42  ;;  %v385_v32 = vrot.slane %v220_v62, 4  ;;  %v188_v42 = vmul.f32 %v184_v28, %v175_v35 }
  0xbf   :  { %v434_v34 = vsel %vm232_vm0, %v188_v42, %v385_v32 }
  0xc1   :  { %v347_v27 = vpop.permute.xlu1 %346 }
  0xc2   :  { %v352_v29 = vsel %vm350_vm3, %v1369_v19, %v347_v27 }
  0xc3   :  { %v317_v33 = vpop.permute.xlu0 %316  ;;  %v364_v36 = vmul.f32 %v1058_v26, %v352_v29  ;;  %v410_v26 = vrot.slane %v269_v56, 4  ;;  %v411_v29 = vrot.slane %v270_v58, 4  ;;  %v1443_v56 = vld [vmem:[%s1703_s1] sm:$0xf]  ;;  %v263_v58 = vperm.slane %v1333_v50, 5 }
  0xc4   :  { %v321_v39 = vsel %vm318_vm5, %v1372_v22, %v317_v33  ;;  %v326_v40 = vsel %vm318_vm5, %v317_v33, 0.0  ;;  %v386_v33 = vrot.slane %v221_v63, 4  ;;  %v295_v63 = vperm.slane %v1333_v50, 6 }
  0xc5   :  { %1026 = vmatpush.msk.msra.mxu1 %vm232_vm0, %v364_v36  ;;  %v333_v49 = vmul.f32 %v329_v30, %v321_v39  ;;  %v334_v51 = vmul.f32 %v330_v31, %v326_v40  ;;  %v302_v30 = vmul.f32 %v298_v60, %v294_v2  ;;  %v398_v31 = vld.sshfl [vmem:[#allocation1 + $0x10] sm:$0xff pattern:$0x75316420]  ;;  %v328_v36 = vperm.slane %v1330_v46, 7 }
  0xc6   :  { %v438_v45 = vsel %vm232_vm0, %v398_v31, %v410_v26  ;;  %v439_v47 = vsel %vm232_vm0, %v399_v37, %v411_v29  ;;  %v267_v2 = vmul.f32 %v263_v58, %v255_v59  ;;  %v118_v37 = vperm.slane %v1333_v50, 0  ;;  %v827_v58 = vld [vmem:[%s1707_s5] sm:$0xff] }
  0xc7   :  { %v422_v4 = vrot.slane %v333_v49, 4  ;;  %v423_v6 = vrot.slane %v334_v51, 4  ;;  %v327_v51 = vperm.slane %v1333_v50, 7 }
  0xc8   :  { %v408_v26 = vrot.slane %v267_v2, 4 }
  0xc9   :  { %v349_v3 = vpop.permute.xlu1 %348  ;;  %v442_v40 = vsel %vm232_vm0, %v301_v20, %v422_v4 }
  0xca   :  { %v353_v7 = vsel %vm350_vm3, %v347_v27, %v349_v3  ;;  %v358_v10 = vsel %vm350_vm3, %v349_v3, 0.0  ;;  %v176_v27 = vsel %vm173_vm4, %v1355_v9, %v1357_v11  ;;  %v443_v9 = vsel %vm232_vm0, %v302_v30, %v423_v6 }
  0xcb   :  { %v313_v14 = vpop.permute.xlu0 %312  ;;  %v365_v21 = vmul.f32 %v1059_v52, %v353_v7  ;;  %v366_v24 = vmul.f32 %v1060_v54, %v358_v10  ;;  %v215_v11 = vperm.slane %v1330_v46, 3  ;;  %v189_v44 = vmul.f32 %v185_v53, %v176_v27 }
  0xcc   :  { %v320_v39 = vsel %vm318_vm5, %v313_v14, %v1372_v22  ;;  %v296_v22 = vperm.slane %v1330_v46, 6  ;;  %v319_v53 = vsel %vm318_vm5, %v1363_v16, %v313_v14  ;;  %v409_v16 = vrot.slane %v268_v5, 4 }
  0xcd   :  { %1028 = vmatpush.msk.msra.mxu2 %vm232_vm0, %v365_v21  ;;  %1030 = vmatpush.msk.msra.mxu3 %vm232_vm0, %v366_v24  ;;  %v332_v48 = vmul.f32 %v328_v36, %v320_v39  ;;  %v435_v28 = vsel %vm232_vm0, %v189_v44, %v386_v33  ;;  %v331_v62 = vmul.f32 %v327_v51, %v319_v53  ;;  %v182_v6 = vperm.slane %v1333_v50, 2 }
  0xce   :  { %v437_v4 = vsel %vm232_vm0, %v397_v0, %v409_v16  ;;  %v183_v7 = vperm.slane %v1330_v46, 2  ;;  %v984_v16 = vld [vmem:[%s1710_s8] sm:$0xff] }
  0xcf   :  { %518 = vmatpush.msra.mxu2 %v442_v40  ;;  %538 = vmatpush.msra.mxu3 %v443_v9  ;;  %v421_v60 = vrot.slane %v332_v48, 4  ;;  %v420_v35 = vrot.slane %v331_v62, 4 }
  0xd1   :  { %v198_v49 = vpop.permute.xlu1 %197  ;;  %519 = vmatpush.msra.mxu2 %v438_v45  ;;  %539 = vmatpush.msra.mxu3 %v439_v47  ;;  %v372_v45 = vrot.slane %v1378_v25, 4 }
  0xd2   :  { %v206_v52 = vsel %vm205_vm7, %v198_v49, %v1339_v57  ;;  %v213_v3 = vsel %vm205_vm7, 0.0, %v198_v49 }
  0xd3   :  { %v219_v54 = vmul.f32 %v215_v11, %v206_v52  ;;  %v281_v55 = vpop.permute.xlu0 %280  ;;  %520 = vmatpush.msra.mxu2 %v434_v34  ;;  %540 = vmatpush.msra.mxu3 %v435_v28 }
  0xd4   :  { %v288_v57 = vsel %vm286_vm8, %v281_v55, %v1367_v18  ;;  %v287_v15 = vsel %vm286_vm8, %v1359_v13, %v281_v55  ;;  %v1061_v18 = vld [vmem:[#allocation2 + $0x20] ss:$0 sm:$0xff]  ;;  %v149_v13 = vsel %vm141_vm2, 0.0, %v1374_v23  ;;  %v396_v23 = vld.sshfl [vmem:[#allocation1] sm:$0xff pattern:$0x75316420] }
  0xd5   :  { %v300_v61 = vmul.f32 %v296_v22, %v288_v57  ;;  %521 = vmatpush.msra.mxu2 %v1350_v1  ;;  %541 = vmatpush.msra.mxu3 %v1353_v8  ;;  %v150_v1 = vperm.slane %v1333_v50, 1  ;;  %v214_v8 = vperm.slane %v1333_v50, 3  ;;  %v299_v12 = vmul.f32 %v295_v63, %v287_v15  ;;  %v974_v57 = vld [vmem:[%s1709_s7] sm:$0xff]  ;;  %v1062_v15 = vld [vmem:[#allocation5 + $0x20] ss:$0 sm:$0xff] }
  0xd6   :  { %1029 = vmatmul.msk.f32.vlgmr.msra.gmra.mxu2 %vm450_vm9, %v1443_v56  ;;  %1031 = vmatmul.msk.f32.vlgmr.msra.gmra.mxu3 %vm450_vm9, %v1443_v56  ;;  %v384_v27 = vrot.slane %v219_v54, 4 }
  0xd7   :  { %v441_v17 = vsel %vm232_vm0, %v300_v61, %v421_v60  ;;  %v218_v29 = vmul.f32 %v214_v8, %v213_v3  ;;  %v154_v31 = vmul.f32 %v150_v1, %v149_v13  ;;  %v440_v36 = vsel %vm232_vm0, %v299_v12, %v420_v35  ;;  %v1063_v3 = vld [vmem:[#allocation5 + $0x28] ss:$0 sm:$0xff] }
  0xd8   :  { %498 = vmatpush.msra.mxu1 %v441_v17 }
  0xd9   :  { %v343_v10 = vpop.permute.xlu1 %342  ;;  %v383_v39 = vrot.slane %v218_v29, 4  ;;  %v371_v40 = vrot.slane %v154_v31, 4 }
  0xda   :  { %499 = vmatpush.msra.mxu1 %v437_v4  ;;  %v351_v14 = vsel %vm350_vm3, %v343_v10, %v1369_v19 }
  0xdb   :  { %v166_v21 = vpop.permute.xlu0 %165  ;;  %v363_v24 = vmul.f32 %v1061_v18, %v351_v14  ;;  %v1588_v14 = vld [vmem:[#allocation5] sm:$0xff] }
  0xdc   :  { %v174_v20 = vsel %vm173_vm4, %v166_v21, %v1326_v43  ;;  %v181_v30 = vsel %vm173_vm4, 0.0, %v166_v21  ;;  %v436_v43 = vsel %vm232_vm0, %v396_v23, %v408_v26  ;;  %v731_v21 = vperm.slane %v1588_v14, 7 }
  0xdd   :  { %v187_v32 = vmul.f32 %v183_v7, %v174_v20  ;;  %1024 = vmatpush.msk.msra.mxu0 %vm232_vm0, %v363_v24  ;;  %v186_v33 = vmul.f32 %v182_v6, %v181_v30  ;;  %v683_v24 = vperm.slane %v1588_v14, 5  ;;  %v1064_v20 = vld [vmem:[#allocation5 + $0x30] ss:$0 sm:$0xff]  ;;  %v1065_v30 = vld [vmem:[#allocation5 + $0x38] ss:$0 sm:$0xff] }
  0xdf   :  { %v433_v19 = vsel %vm232_vm0, %v187_v32, %v384_v27  ;;  %478 = vmatpush.msra.mxu0 %v440_v36  ;;  %v432_v44 = vsel %vm232_vm0, %v186_v33, %v383_v39  ;;  %v707_v32 = vperm.slane %v1588_v14, 6  ;;  %v1596_v33 = vld [vmem:[#allocation5 + $0x8] sm:$0xff] }
  0xe0   :  { %500 = vmatpush.msra.mxu1 %v433_v19  ;;  %v732_v39 = vperm.slane %v1596_v33, 7 }
  0xe1   :  { %v102_v9 = vpop.permute.xlu1 %101  ;;  %479 = vmatpush.msra.mxu0 %v436_v43 }
  0xe2   :  { %v110_v11 = vsel %vm109_vm1, %v102_v9, %v1324_v41  ;;  %v117_v42 = vsel %vm109_vm1, 0.0, %v102_v9 }
  0xe3   :  { %v122_v47 = vmul.f32 %v118_v37, %v117_v42  ;;  %v123_v50 = vmul.f32 %v119_v38, %v110_v11  ;;  %480 = vmatpush.msra.mxu0 %v432_v44  ;;  %v659_v38 = vperm.slane %v1588_v14, 4 }
  0xe5   :  { %v428_v46 = vsel %vm232_vm0, %v122_v47, %v371_v40  ;;  %v429_v5 = vsel %vm232_vm0, %v123_v50, %v372_v45 }
  0xe6   :  { %481 = vmatpush.msra.mxu0 %v428_v46  ;;  %501 = vmatpush.msra.mxu1 %v429_v5  ;;  %v708_v5 = vperm.slane %v1596_v33, 6 }
  0xe7   :  { %1025 = vmatmul.msk.f32.vlgmr.msra.gmra.mxu0 %vm450_vm9, %v1443_v56  ;;  %1027 = vmatmul.msk.f32.vlgmr.msra.gmra.mxu1 %vm450_vm9, %v1443_v56 }
  0xf2   :  { %v448_v41 = vpop.permute.xlu2 %447 }
 0x159   :  { %v523_v34 = vpop.f32.mrf.mxu2  ;;  %v543_v54 = vpop.f32.mrf.mxu3 }
 0x15a   :  { %v524_v28 = vadd.f32 %v523_v34, %v448_v41  ;;  %v544_v55 = vadd.f32 %v543_v54, %v448_v41 }
 0x15c   :  { %v1513_v53 = vmax.f32 %v524_v28, 0.0  ;;  %v1521_v56 = vmax.f32 %v544_v55, 0.0  ;;  %v684_v55 = vperm.slane %v1596_v33, 5 }
 0x164   :  { %v483_v48 = vpop.f32.mrf.mxu0  ;;  %v503_v49 = vpop.f32.mrf.mxu1 }
 0x165   :  { %v484_v22 = vadd.f32 %v483_v48, %v448_v41  ;;  %v504_v25 = vadd.f32 %v503_v49, %v448_v41 }
 0x167   :  { %v1491_v51 = vmax.f32 %v484_v22, 0.0  ;;  %v1493_v52 = vmax.f32 %v504_v25, 0.0 }
 0x169   :  { %637 = vrot.lane.b32.xlu2 %v1493_v52, %s1180_s13  ;;  %739 = vrot.lane.b32.xlu0 %v1491_v51, %s1184_s17  ;;  %v663_v50 = vmul.f32 %v659_v38, %v1491_v51 }
 0x16a   :  { %715 = vrot.lane.b32.xlu1 %v1491_v51, %s1183_s16 }
 0x171   :  { %717 = vrot.lane.b32.xlu2 %v1493_v52, %s1183_s16  ;;  %691 = vrot.lane.b32.xlu0 %v1491_v51, %s1182_s15 }
 0x172   :  { %741 = vrot.lane.b32.xlu1 %v1493_v52, %s1184_s17 }
 0x179   :  { %589 = vrot.lane.b32.xlu2 %v1493_v52, %s1178_s0  ;;  %635 = vrot.lane.b32.xlu0 %v1491_v51, %s1180_s13 }
 0x17a   :  { %613 = vrot.lane.b32.xlu1 %v1493_v52, %s1179_s12 }
 0x181   :  { %669 = vrot.lane.b32.xlu2 %v1493_v52, %s1181_s14  ;;  %719 = vrot.lane.b32.xlu0 %v1513_v53, %s1183_s16 }
 0x182   :  { %667 = vrot.lane.b32.xlu1 %v1491_v51, %s1181_s14 }
 0x189   :  { %565 = vrot.lane.b32.xlu2 %v1493_v52, %s1177_s9  ;;  %745 = vrot.lane.b32.xlu0 %v1521_v56, %s1184_s17 }
 0x18a   :  { %693 = vrot.lane.b32.xlu1 %v1493_v52, %s1182_s15 }
 0x191   :  { %743 = vrot.lane.b32.xlu2 %v1513_v53, %s1184_s17  ;;  %695 = vrot.lane.b32.xlu0 %v1513_v53, %s1182_s15 }
 0x192   :  { %721 = vrot.lane.b32.xlu1 %v1521_v56, %s1183_s16 }
 0x199   :  { %673 = vrot.lane.b32.xlu2 %v1521_v56, %s1181_s14  ;;  %639 = vrot.lane.b32.xlu0 %v1513_v53, %s1180_s13 }
 0x19a   :  { %671 = vrot.lane.b32.xlu1 %v1513_v53, %s1181_s14 }
 0x1a1   :  { %615 = vrot.lane.b32.xlu2 %v1513_v53, %s1179_s12  ;;  %591 = vrot.lane.b32.xlu0 %v1513_v53, %s1178_s0 }
 0x1a2   :  { %697 = vrot.lane.b32.xlu1 %v1521_v56, %s1182_s15 }
 0x1a9   :  { %617 = vrot.lane.b32.xlu2 %v1521_v56, %s1179_s12  ;;  %641 = vrot.lane.b32.xlu0 %v1521_v56, %s1180_s13 }
 0x1aa   :  { %593 = vrot.lane.b32.xlu1 %v1521_v56, %s1178_s0 }
 0x1b1   :  { %587 = vrot.lane.b32.xlu2 %v1491_v51, %s1178_s0  ;;  %567 = vrot.lane.b32.xlu0 %v1513_v53, %s1177_s9 }
 0x1b2   :  { %569 = vrot.lane.b32.xlu1 %v1521_v56, %s1177_s9 }
 0x1b9   :  { %830 = vperm.xlu2 %1056, %v827_v58   ;;  %611 = vrot.lane.b32.xlu0 %v1491_v51, %s1179_s12  ;;  %v1613_v58 = vld [vmem:[#allocation5 + $0x18] sm:$0xff] }
 0x1ba   :  { %563 = vrot.lane.b32.xlu1 %v1491_v51, %s1177_s9 }
 0x1c1   :  { %977 = vperm.xlu2 %1056, %v974_v57   ;;  %v1615_v57 = vld [vmem:[#allocation5 + $0x10] sm:$0xff] }
 0x1c3   :  { %v1569_v59 = vpop.permute.xlu2 %637 }
 0x1c9   :  { %987 = vperm.xlu2 %1056, %v984_v16  }
 0x1cb   :  { %v718_v60 = vpop.permute.xlu2 %717 }
 0x1d3   :  { %v1574_v61 = vpop.permute.xlu2 %589 }
 0x1db   :  { %v1576_v62 = vpop.permute.xlu2 %669  ;;  %v740_v63 = vpop.permute.xlu0 %739 }
 0x1dc   :  { %v716_v0 = vpop.permute.xlu1 %715 }
 0x1dd   :  { %v723_v26 = vsel %vm318_vm5, %v716_v0, %v718_v60  ;;  %v733_v0 = vperm.slane %v1615_v57, 7 }
 0x1de   :  { %v735_v31 = vmul.f32 %v731_v21, %v723_v26 }
 0x1e0   :  { %v803_v11 = vrot.slane %v735_v31, 4 }
 0x1e3   :  { %v1578_v17 = vpop.permute.xlu2 %565  ;;  %v692_v18 = vpop.permute.xlu0 %691 }
 0x1e4   :  { %v742_v2 = vpop.permute.xlu1 %741 }
 0x1e5   :  { %v747_v1 = vsel %vm350_vm3, %v740_v63, %v742_v2  ;;  %v686_v63 = vperm.slane %v1613_v58, 5 }
 0x1e6   :  { %v759_v8 = vmul.f32 %v1062_v15, %v747_v1  ;;  %v734_v15 = vperm.slane %v1613_v58, 7 }
 0x1e8   :  { %1032 = vmatpush.msk.msrb.mxu0 %vm232_vm0, %v759_v8  ;;  %v685_v8 = vperm.slane %v1615_v57, 5 }
 0x1eb   :  { %v744_v4 = vpop.permute.xlu2 %743  ;;  %v1582_v6 = vpop.permute.xlu0 %635 }
 0x1ec   :  { %v748_v7 = vsel %vm350_vm3, %v742_v2, %v744_v4  ;;  %v1585_v10 = vpop.permute.xlu1 %613 }
 0x1ed   :  { %v760_v13 = vmul.f32 %v1063_v3, %v748_v7 }
 0x1ef   :  { %1034 = vmatpush.msk.msrb.mxu1 %vm232_vm0, %v760_v13 }
 0x1f3   :  { %v720_v35 = vpop.permute.xlu0 %719  ;;  %v674_v25 = vpop.permute.xlu2 %673 }
 0x1f4   :  { %v668_v12 = vpop.permute.xlu1 %667  ;;  %v724_v42 = vsel %vm318_vm5, %v718_v60, %v720_v35  ;;  %v660_v60 = vperm.slane %v1596_v33, 4  ;;  %v682_v2 = vsel %vm254_vm6, %v674_v25, 0.0 }
 0x1f5   :  { %v675_v29 = vsel %vm254_vm6, %v668_v12, %v1576_v62  ;;  %v736_v46 = vmul.f32 %v732_v39, %v724_v42  ;;  %v653_v12 = vperm.slane %v1615_v57, 3  ;;  %v690_v26 = vmul.f32 %v686_v63, %v682_v2 }
 0x1f6   :  { %v687_v27 = vmul.f32 %v683_v24, %v675_v29  ;;  %v664_v24 = vmul.f32 %v660_v60, %v1493_v52  ;;  %v605_v60 = vperm.slane %v1615_v57, 1 }
 0x1f7   :  { %v804_v34 = vrot.slane %v736_v46, 4  ;;  %v794_v38 = vrot.slane %v690_v26, 4 }
 0x1f8   :  { %v791_v44 = vrot.slane %v687_v27, 4  ;;  %v710_v27 = vperm.slane %v1613_v58, 6 }
 0x1fa   :  { %v819_v41 = vsel %vm232_vm0, %v663_v50, %v791_v44 }
 0x1fb   :  { %v746_v23 = vpop.permute.xlu0 %745 }
 0x1fc   :  { %v749_v36 = vsel %vm350_vm3, %v744_v4, %v746_v23  ;;  %v754_v19 = vsel %vm350_vm3, %v746_v23, 0.0  ;;  %v694_v37 = vpop.permute.xlu1 %693  ;;  %v616_v4 = vpop.permute.xlu2 %615  ;;  %v661_v23 = vperm.slane %v1615_v57, 4 }
 0x1fd   :  { %v761_v43 = vmul.f32 %v1064_v20, %v749_v36  ;;  %v762_v40 = vmul.f32 %v1065_v30, %v754_v19  ;;  %v699_v9 = vsel %vm286_vm8, %v692_v18, %v694_v37  ;;  %v629_v36 = vperm.slane %v1615_v57, 2 }
 0x1fe   :  { %v711_v45 = vmul.f32 %v707_v32, %v699_v9 }
 0x1ff   :  { %1036 = vmatpush.msk.msrb.mxu2 %vm232_vm0, %v761_v43  ;;  %1038 = vmatpush.msk.msrb.mxu3 %vm232_vm0, %v762_v40 }
 0x200   :  { %v823_v47 = vsel %vm232_vm0, %v711_v45, %v803_v11  ;;  %v620_v45 = vsel %vm173_vm4, %v1585_v10, %v616_v4 }
 0x201   :  { %860 = vmatpush.msrb.mxu0 %v823_v47  ;;  %v665_v47 = vmul.f32 %v661_v23, %v1513_v53  ;;  %v603_v23 = vperm.slane %v1588_v14, 1 }
 0x203   :  { %861 = vmatpush.msrb.mxu0 %v819_v41  ;;  %v696_v48 = vpop.permute.xlu0 %695 }
 0x204   :  { %v700_v49 = vsel %vm286_vm8, %v694_v37, %v696_v48  ;;  %v722_v22 = vpop.permute.xlu1 %721  ;;  %v662_v37 = vperm.slane %v1613_v58, 4 }
 0x205   :  { %v712_v28 = vmul.f32 %v708_v5, %v700_v49  ;;  %v725_v1 = vsel %vm318_vm5, %v720_v35, %v722_v22  ;;  %v730_v7 = vsel %vm318_vm5, %v722_v22, 0.0  ;;  %v709_v35 = vperm.slane %v1615_v57, 6  ;;  %v618_v49 = vpop.permute.xlu2 %617 }
 0x206   :  { %v737_v29 = vmul.f32 %v733_v0, %v725_v1  ;;  %v738_v20 = vmul.f32 %v734_v15, %v730_v7  ;;  %v666_v41 = vmul.f32 %v662_v37, %v1521_v56  ;;  %v633_v22 = vmul.f32 %v629_v36, %v620_v45 }
 0x207   :  { %v824_v54 = vsel %vm232_vm0, %v712_v28, %v804_v34  ;;  %v630_v28 = vperm.slane %v1613_v58, 2  ;;  %v606_v15 = vperm.slane %v1613_v58, 1  ;;  %v582_v7 = vperm.slane %v1613_v58, 0 }
 0x208   :  { %880 = vmatpush.msrb.mxu1 %v824_v54  ;;  %v805_v39 = vrot.slane %v737_v29, 4  ;;  %v806_v9 = vrot.slane %v738_v20, 4  ;;  %v822_v34 = vsel %vm232_vm0, %v666_v41, %v794_v38  ;;  %v621_v54 = vsel %vm173_vm4, %v616_v4, %v618_v49 }
 0x209   :  { %v604_v36 = vperm.slane %v1596_v33, 1  ;;  %v627_v38 = vperm.slane %v1588_v14, 2 }
 0x20b   :  { %v640_v51 = vpop.permute.xlu0 %639 }
 0x20c   :  { %v672_v16 = vpop.permute.xlu1 %671 }
 0x20d   :  { %v676_v18 = vsel %vm254_vm6, %v1576_v62, %v672_v16  ;;  %v677_v13 = vsel %vm254_vm6, %v672_v16, %v674_v25  ;;  %v644_v62 = vsel %vm205_vm7, %v1569_v59, %v640_v51 }
 0x20e   :  { %v688_v3 = vmul.f32 %v684_v55, %v676_v18  ;;  %v689_v30 = vmul.f32 %v685_v8, %v677_v13  ;;  %v657_v52 = vmul.f32 %v653_v12, %v644_v62  ;;  %v634_v18 = vmul.f32 %v630_v28, %v621_v54  ;;  %v588_v62 = vpop.permute.xlu2 %587 }
 0x20f   :  { %v651_v13 = vperm.slane %v1588_v14, 3 }
 0x210   :  { %v792_v21 = vrot.slane %v688_v3, 4  ;;  %v793_v11 = vrot.slane %v689_v30, 4  ;;  %v781_v50 = vrot.slane %v657_v52, 4 }
 0x212   :  { %v820_v31 = vsel %vm232_vm0, %v664_v24, %v792_v21  ;;  %v821_v25 = vsel %vm232_vm0, %v665_v47, %v793_v11  ;;  %v817_v16 = vsel %vm232_vm0, %v633_v22, %v781_v50  ;;  %v652_v21 = vperm.slane %v1596_v33, 3 }
 0x213   :  { %881 = vmatpush.msrb.mxu1 %v820_v31  ;;  %v592_v32 = vpop.permute.xlu0 %591  ;;  %v650_v24 = vsel %vm205_vm7, 0.0, %v1582_v6 }
 0x214   :  { %v698_v19 = vpop.permute.xlu1 %697  ;;  %v596_v0 = vsel %vm141_vm2, %v1574_v61, %v592_v32 }
 0x215   :  { %v701_v43 = vsel %vm286_vm8, %v696_v48, %v698_v19  ;;  %v706_v40 = vsel %vm286_vm8, %v698_v19, 0.0  ;;  %v654_v48 = vperm.slane %v1613_v58, 3  ;;  %v609_v8 = vmul.f32 %v605_v60, %v596_v0 }
 0x216   :  { %v713_v42 = vmul.f32 %v709_v35, %v701_v43  ;;  %v714_v44 = vmul.f32 %v710_v27, %v706_v40  ;;  %v550_v27 = vld [vmem:[%s1706_s4] sm:$0xff]  ;;  %v579_v43 = vperm.slane %v1588_v14, 0  ;;  %v580_v40 = vperm.slane %v1596_v33, 0  ;;  %s1187_s4 = smov [#allocation8]  }
 0x217   :  { %v769_v35 = vrot.slane %v609_v8, 4  ;;  %s1011_s8 = sshll.u32 %s1187_s4, 4  ;;  %s1012_s8 = int_to_ptr.vmem [resolvable:$true] %s1011_s8 }
 0x218   :  { %v825_v46 = vsel %vm232_vm0, %v713_v42, %v805_v39  ;;  %v826_v5 = vsel %vm232_vm0, %v714_v44, %v806_v9  ;;  %v628_v39 = vperm.slane %v1596_v33, 2 }
 0x219   :  { %900 = vmatpush.msrb.mxu2 %v825_v46  ;;  %920 = vmatpush.msrb.mxu3 %v826_v5 }
 0x21b   :  { %901 = vmatpush.msrb.mxu2 %v821_v25  ;;  %921 = vmatpush.msrb.mxu3 %v822_v34  ;;  %v642_v53 = vpop.permute.xlu0 %641 }
 0x21c   :  { %v645_v55 = vsel %vm205_vm7, %v640_v51, %v642_v53  ;;  %v594_v56 = vpop.permute.xlu1 %593  ;;  %v581_v51 = vperm.slane %v1615_v57, 0  ;;  %v643_v57 = vsel %vm205_vm7, %v1582_v6, %v1569_v59  ;;  %v595_v59 = vsel %vm141_vm2, %v588_v62, %v1574_v61  ;;  %v831_v53 = vpop.permute.xlu2 %830 }
 0x21d   :  { %v658_v63 = vmul.f32 %v654_v48, %v645_v55  ;;  %902 = vmatpush.msrb.mxu2 %v817_v16  ;;  %v597_v1 = vsel %vm141_vm2, %v592_v32, %v594_v56  ;;  %v655_v32 = vmul.f32 %v651_v13, %v650_v24  ;;  %v656_v19 = vmul.f32 %v652_v21, %v643_v57 }
 0x21e   :  { %v610_v4 = vmul.f32 %v606_v15, %v597_v1  ;;  %v602_v6 = vsel %vm141_vm2, 0.0, %v588_v62  ;;  %v608_v61 = vmul.f32 %v604_v36, %v595_v59 }
 0x21f   :  { %v782_v2 = vrot.slane %v658_v63, 4  ;;  %v607_v9 = vmul.f32 %v603_v23, %v602_v6  ;;  %v779_v42 = vrot.slane %v655_v32, 4  ;;  %v780_v44 = vrot.slane %v656_v19, 4 }
 0x220   :  { %v770_v30 = vrot.slane %v610_v4, 4  ;;  %v768_v22 = vrot.slane %v608_v61, 4  ;;  %v1186_v4 = vmov 512.0  }
 0x221   :  { %v818_v3 = vsel %vm232_vm0, %v634_v18, %v782_v2  ;;  %v767_v48 = vrot.slane %v607_v9, 4  ;;  %1066 = vrcp.f32 %v1186_v4 }
 0x222   :  { %922 = vmatpush.msrb.mxu3 %v818_v3 }
 0x223   :  { %v568_v12 = vpop.permute.xlu0 %567 }
 0x224   :  { %v572_v26 = vsel %vm109_vm1, %v1578_v17, %v568_v12  ;;  %v570_v29 = vpop.permute.xlu1 %569 }
 0x225   :  { %v585_v20 = vmul.f32 %v581_v51, %v572_v26  ;;  %v573_v58 = vsel %vm109_vm1, %v568_v12, %v570_v29 }
 0x226   :  { %v586_v31 = vmul.f32 %v582_v7, %v573_v58 }
 0x227   :  { %v813_v52 = vsel %vm232_vm0, %v585_v20, %v769_v35  ;;  %v1067_v7 = vpop.eup %1066 }
 0x228   :  { %903 = vmatpush.msrb.mxu2 %v813_v52  ;;  %v814_v37 = vsel %vm232_vm0, %v586_v31, %v770_v30  ;;  %v938_v13 = vmul.f32 512.0, %v1067_v7  ;;  %vm942_vm10 = vweird.f32 %v1067_v7 }
 0x229   :  { %923 = vmatpush.msrb.mxu3 %v814_v37  ;;  %1037 = vmatmul.msk.f32.vlgmr.msrb.gmra.mxu2 %vm450_vm9, %v550_v27 }
 0x22a   :  { %1039 = vmatmul.msk.f32.vlgmr.msrb.gmra.mxu3 %vm450_vm9, %v550_v27  ;;  %v939_v12 = vsub.f32 1.0, %v938_v13 }
 0x22b   :  { %v612_v11 = vpop.permute.xlu0 %611 }
 0x22c   :  { %v619_v45 = vsel %vm173_vm4, %v612_v11, %v1585_v10  ;;  %v626_v47 = vsel %vm173_vm4, 0.0, %v612_v11  ;;  %v564_v50 = vpop.permute.xlu1 %563  ;;  %v940_v21 = vmul.f32 %v1067_v7, %v939_v12 }
 0x22d   :  { %v631_v46 = vmul.f32 %v627_v38, %v626_v47  ;;  %v632_v5 = vmul.f32 %v628_v39, %v619_v45  ;;  %v571_v41 = vsel %vm109_vm1, %v564_v50, %v1578_v17  ;;  %v578_v14 = vsel %vm109_vm1, 0.0, %v564_v50 }
 0x22e   :  { %v583_v49 = vmul.f32 %v579_v43, %v578_v14  ;;  %v584_v33 = vmul.f32 %v580_v40, %v571_v41  ;;  %v941_v24 = vadd.f32 %v1067_v7, %v940_v21  ;;  %v978_v43 = vpop.permute.xlu2 %977 }
 0x22f   :  { %v815_v25 = vsel %vm232_vm0, %v631_v46, %v779_v42  ;;  %v816_v34 = vsel %vm232_vm0, %v632_v5, %v780_v44 }
 0x230   :  { %862 = vmatpush.msrb.mxu0 %v815_v25  ;;  %882 = vmatpush.msrb.mxu1 %v816_v34  ;;  %v811_v10 = vsel %vm232_vm0, %v583_v49, %v767_v48  ;;  %v812_v28 = vsel %vm232_vm0, %v584_v33, %v768_v22  ;;  %v943_v26 = vsel %vm942_vm10, %v1067_v7, %v941_v24  ;;  %v994_v49 = vld [vmem:[#allocation7] sm:$0xff]  ;;  %v995_v33 = vld [vmem:[#allocation7 + $0x8] sm:$0xff]  ;;  %v996_v48 = vld [vmem:[#allocation7 + $0x10] sm:$0xff] }
 0x232   :  { %863 = vmatpush.msrb.mxu0 %v811_v10  ;;  %883 = vmatpush.msrb.mxu1 %v812_v28  ;;  %v997_v28 = vld [vmem:[#allocation7 + $0x18] sm:$0xff] }
 0x233   :  { %1033 = vmatmul.msk.f32.vlgmr.msrb.gmra.mxu0 %vm450_vm9, %v550_v27  ;;  %1035 = vmatmul.msk.f32.vlgmr.msrb.gmra.mxu1 %vm450_vm9, %v550_v27 }
 0x236   :  { %v988_v14 = vpop.permute.xlu2 %987 }
 0x2ac   :  { %v905_v17 = vpop.f32.mrf.mxu2 }
 0x2ad   :  { %v925_v54 = vpop.f32.mrf.mxu3  ;;  %v906_v16 = vadd.f32 %v905_v17, %v831_v53 }
 0x2ae   :  { %v926_v0 = vadd.f32 %v925_v54, %v831_v53 }
 0x2af   :  { %v930_v2 = vmax.f32 %v906_v16, 0.0 }
 0x2b0   :  { %v865_v55 = vpop.f32.mrf.mxu0  ;;  %v885_v56 = vpop.f32.mrf.mxu1  ;;  %v931_v8 = vmax.f32 %v926_v0, 0.0 }
 0x2b1   :  { %v866_v60 = vadd.f32 %v865_v55, %v831_v53  ;;  %v886_v63 = vadd.f32 %v885_v56, %v831_v53 }
 0x2b3   :  { %v928_v15 = vmax.f32 %v866_v60, 0.0  ;;  %v929_v18 = vmax.f32 %v886_v63, 0.0 }
 0x2b5   :  { %v932_v1 = vadd.f32 %v929_v18, %v928_v15 }
 0x2b7   :  { %v933_v3 = vadd.f32 %v932_v1, %v930_v2 }
 0x2b9   :  { %v934_v51 = vadd.f32 %v933_v3, %v931_v8 }
 0x2bb   :  { %935 = vadd.xlane.f32.xlu0 %v934_v51 }
 0x32e   :  { %v936_v29 = vpop.xlane.xlu0 %935 }
 0x32f   :  { %v944_v57 = vmul.f32 %v943_v26, %v936_v29 }
 0x331   :  { %v945_v62 = vsub.f32 %v928_v15, %v944_v57  ;;  %v946_v35 = vsub.f32 %v929_v18, %v944_v57  ;;  %v947_v20 = vsub.f32 %v930_v2, %v944_v57  ;;  %v948_v58 = vsub.f32 %v931_v8, %v944_v57 }
 0x333   :  { %v949_v30 = vmul.f32 %v945_v62, %v945_v62  ;;  %v950_v31 = vmul.f32 %v946_v35, %v946_v35  ;;  %v951_v27 = vmul.f32 %v947_v20, %v947_v20  ;;  %v952_v23 = vmul.f32 %v948_v58, %v948_v58 }
 0x335   :  { %v953_v32 = vadd.f32 %v950_v31, %v949_v30 }
 0x337   :  { %v954_v36 = vadd.f32 %v953_v32, %v951_v27 }
 0x339   :  { %v955_v52 = vadd.f32 %v954_v36, %v952_v23 }
 0x33b   :  { %956 = vadd.xlane.f32.xlu1 %v955_v52 }
 0x3ae   :  { %v957_v19 = vpop.xlane.xlu1 %956 }
 0x3af   :  { %v958_v59 = vmul.f32 %v957_v19, %v943_v26 }
 0x3b1   :  { %v959_v6 = vadd.f32 1e-05, %v958_v59 }
 0x3b3   :  { %1068 = vrsqrt.f32 %v959_v6  ;;  %vm966_vm12 = vweird.f32 %v959_v6 }
 0x3b9   :  { %v1069_v37 = vpop.eup %1068 }
 0x3ba   :  { %v961_v38 = vmul.f32 %v1069_v37, %v959_v6  ;;  %vm967_vm11 = vweird.f32 %v1069_v37 }
 0x3bb   :  { %vm968_vm13 = vmor %vm966_vm12, %vm967_vm11 }
 0x3bc   :  { %v962_v39 = vmul.f32 %v1069_v37, %v961_v38 }
 0x3be   :  { %v963_v40 = vmul.f32 0.5, %v962_v39 }
 0x3c0   :  { %v964_v9 = vsub.f32 1.5, %v963_v40 }
 0x3c2   :  { %v965_v61 = vmul.f32 %v1069_v37, %v964_v9 }
 0x3c4   :  { %v969_v11 = vsel %vm968_vm13, %v1069_v37, %v965_v61 }
 0x3c5   :  { %v970_v42 = vmul.f32 %v969_v11, %v945_v62  ;;  %v971_v44 = vmul.f32 %v969_v11, %v946_v35  ;;  %v972_v45 = vmul.f32 %v969_v11, %v947_v20  ;;  %v973_v47 = vmul.f32 %v969_v11, %v948_v58 }
 0x3c7   :  { %v980_v50 = vmul.f32 %v978_v43, %v970_v42  ;;  %v981_v46 = vmul.f32 %v978_v43, %v971_v44  ;;  %v982_v5 = vmul.f32 %v978_v43, %v972_v45  ;;  %v983_v41 = vmul.f32 %v978_v43, %v973_v47 }
 0x3c9   :  { %v990_v22 = vadd.f32 %v988_v14, %v980_v50  ;;  %v991_v25 = vadd.f32 %v988_v14, %v981_v46  ;;  %v992_v34 = vadd.f32 %v988_v14, %v982_v5  ;;  %v993_v10 = vadd.f32 %v988_v14, %v983_v41 }
 0x3cb   :  { %v998_v17 = vmul.f32 %v994_v49, %v990_v22  ;;  %v999_v53 = vmul.f32 %v995_v33, %v991_v25  ;;  %v1000_v54 = vmul.f32 %v996_v48, %v992_v34  ;;  %v1001_v55 = vmul.f32 %v997_v28, %v993_v10 }
 0x3cd   :  { %1002 = vst [vmem:[#allocation8] sm:$0xff] %v998_v17 }
 0x3ce   :  { %1003 = vst [vmem:[#allocation8 + $0x8] sm:$0xff] %v999_v53 }
 0x3cf   :  { %1004 = vst [vmem:[#allocation8 + $0x10] sm:$0xff] %v1000_v54 }
 0x3d0   :  { %1005 = vst [vmem:[#allocation8 + $0x18] sm:$0xff] %v1001_v55 }
 0x3d1   :  { %1016 = dma.vmem_to_hbm [thread:$0]  %s1012_s8, 512, %s1014_s6, [#allocation4]  }
 0x3d2   :  { %1170 = dma.done.wait [#allocation4], 512  }
 0x3d3   :  { %1171 = vsyncadd [#allocation4], 4294966784 }
 0x3d4   :  { %1021 = vsyncpa [#allocation3], 1 }
 0x3d5   :  { %1022 = vsyncpa [#allocation6], 1 }
 0x3d6   :  { %1023 = vsyncpa [#allocation4], 1 }

</bundles_post_ra>
